<compile_context>
chip_gen: v6e
topology: v6e:2x2x1
jax: 0.10.0
libtpu: 0.0.40
codegen_flags: <defaults>
</compile_context>

<pallas_src>
import jax
import jax.numpy as jnp
from jax.experimental import pallas as pl
from jax.experimental.pallas import tpu as pltpu

BN_EPS = 1e-5  # torch.nn.BatchNorm1d default eps


def _round_up(x, m):
    return (x + m - 1) // m * m


def make_dcn_kernel(n_features, vocab_pad, n_cross, n_mlp_layers):
    """Builds the Pallas kernel body for a fixed architecture."""

    def kernel(idx_ref, tab_ref, cw_ref, cb_ref, *rest):
        # rest layout: [W'^T, b'_col] * n_mlp_layers, lrw_cn, lrw_mlp, lr_b(SMEM), out
        n_layer_refs = 2 * n_mlp_layers
        mlp_refs = rest[:n_layer_refs]
        lrw_cn_ref = rest[n_layer_refs]
        lrw_mlp_ref = rest[n_layer_refs + 1]
        lr_b_ref = rest[n_layer_refs + 2]
        out_ref = rest[n_layer_refs + 3]

        tb = idx_ref.shape[1]

        # ---- fused embedding lookup: one-hot matmul gather, feature-major ----
        # ids (F, tb) + tables (F, E, Vpad)  ->  x0 (D, tb), batch on the lanes.
        vocab_iota = jax.lax.broadcasted_iota(jnp.int32, (vocab_pad, tb), 0)
        parts = []
        for f in range(n_features):
            onehot = (vocab_iota == idx_ref[f:f + 1, :]).astype(jnp.float32)
            parts.append(jnp.dot(tab_ref[f], onehot,
                                 preferred_element_type=jnp.float32))   # (E, tb)
        x0 = jnp.concatenate(parts, axis=0)                             # (D, tb)

        # ---- CrossNetwork: x_{l+1} = x0 * (w_l . x_l) + b_l + x_l ----
        xl = x0
        for i in range(n_cross):
            w_col = cw_ref[:, i:i + 1]                                   # (D, 1)
            b_col = cb_ref[:, i:i + 1]                                   # (D, 1)
            xw = jnp.sum(xl * w_col, axis=0, keepdims=True)              # (1, tb)
            xl = x0 * xw + b_col + xl

        # ---- MLP (BN folded into W', b'): relu(W'^T h + b'); dropout = identity (eval)
        h = x0
        for li in range(n_mlp_layers):
            wt_ref = mlp_refs[2 * li]                                    # (out, in)
            b_ref = mlp_refs[2 * li + 1]                                 # (out, 1)
            h = jnp.dot(wt_ref[...], h,
                        preferred_element_type=jnp.float32) + b_ref[...]
            h = jnp.maximum(h, 0.0)

        # ---- LR head on concat([cn_out, mlp_out]): sublane reduce -> (1, tb) row
        y = (jnp.sum(xl * lrw_cn_ref[...], axis=0, keepdims=True)
             + jnp.sum(h * lrw_mlp_ref[...], axis=0, keepdims=True)
             + lr_b_ref[0, 0])                                           # (1, tb)
        out_ref[...] = jax.nn.sigmoid(y)                                 # lane-dense store

    return kernel


def dcn_pallas(x_idx, tables, cross_w, cross_b, mlp_params, lr_w, lr_b, *,
               tb=1024, min_grid_steps=8):
    """DCN forward (eval mode) with the embedding gather fused into the kernel.

    x_idx:      (B, F) int32 feature ids.
    tables:     (F, VOCAB, E) f32 embedding tables (all features share E).
    cross_w/b:  (n_cross, D) with D = F * E.
    mlp_params: list of (W, b, gamma, beta, running_mean, running_var).
    lr_w:       (D + mlp_out, 1);  lr_b: (1, 1).
    Returns sigmoid logits of shape (B,), f32.

    tb is the batch tile (batch lives on the 128-lane axis inside the kernel).
    Bigger is better -- per-step compute is tiny so grid-step overhead dominates
    and VMEM is never a constraint at these widths -- so tb is only capped so the
    grid keeps >= min_grid_steps steps (several pipelined steps per v7x core).
    """
    B, F = x_idx.shape
    _, VOCAB, E = tables.shape
    D = F * E
    n_cross = cross_w.shape[0]
    n_mlp_layers = len(mlp_params)
    h_last = mlp_params[-1][0].shape[1]

    # ---- batch tile: multiple of 128 (lane axis), capped to keep the grid deep ----
    tb = _round_up(max(128, tb), 128)
    cap = _round_up(max(1, pl.cdiv(B, min_grid_steps)), 128)
    tb = max(128, min(tb, cap))
    num_tiles = pl.cdiv(B, tb)
    b_pad = num_tiles * tb

    # ---- host-side parameter prep (feature-major layouts) ----
    vocab_pad = _round_up(VOCAB, 8)
    tab_t = jnp.transpose(tables, (0, 2, 1)).astype(jnp.float32)      # (F, E, VOCAB)
    tab_t = jnp.pad(tab_t, ((0, 0), (0, 0), (0, vocab_pad - VOCAB)))  # (F, E, Vpad)

    cw_t = cross_w.T.astype(jnp.float32)                              # (D, n_cross)
    cb_t = cross_b.T.astype(jnp.float32)                              # (D, n_cross)

    # fold BatchNorm (eval mode) into each Linear, then transpose for (out, in) dots
    folded = []
    for (W, b, g, beta, mean, var) in mlp_params:
        scale = g * jax.lax.rsqrt(var + BN_EPS)                       # (1, out)
        Wt = (W * scale).T.astype(jnp.float32)                        # (out, in)
        b_col = ((b - mean) * scale + beta).reshape(-1, 1).astype(jnp.float32)
        folded += [Wt, b_col]

    lrw_cn = lr_w[:D, :].reshape(D, 1).astype(jnp.float32)
    lrw_mlp = lr_w[D:, :].reshape(h_last, 1).astype(jnp.float32)
    lr_b = lr_b.reshape(1, 1).astype(jnp.float32)                     # scalar -> SMEM

    # ---- per-batch input: ids only, feature-major, explicitly zero-padded ----
    idx_t = jnp.pad(x_idx.T.astype(jnp.int32), ((0, 0), (0, b_pad - B)))   # (F, b_pad)

    kernel = make_dcn_kernel(F, vocab_pad, n_cross, n_mlp_layers)

    def const_spec(arr):
        zeros = (0,) * arr.ndim
        return pl.BlockSpec(arr.shape, lambda i, _z=zeros: _z)

    in_specs = ([pl.BlockSpec((F, tb), lambda i: (0, i)),
                 const_spec(tab_t),
                 const_spec(cw_t),
                 const_spec(cb_t)]
                + [const_spec(a) for a in folded]
                + [const_spec(lrw_cn), const_spec(lrw_mlp),
                   pl.BlockSpec(memory_space=pltpu.MemorySpace.SMEM)])
    # Lane-dense output: (1, b_pad) slab, one (1, tb) row-block per grid step.
    out_specs = pl.BlockSpec((1, tb), lambda i: (0, i))

    out = pl.pallas_call(
        kernel,
        out_shape=jax.ShapeDtypeStruct((1, b_pad), jnp.float32),
        grid=(num_tiles,),
        in_specs=in_specs,
        out_specs=out_specs,
        compiler_params=pltpu.CompilerParams(
            dimension_semantics=("parallel",)),
    )(idx_t, tab_t, cw_t, cb_t, *folded, lrw_cn, lrw_mlp, lr_b)
    return out[0, :B]


def dcn_reference(embed_x, cross_w, cross_b, mlp_params, lr_w, lr_b):
    """Pure-JAX reference mirroring the torch forward (eval mode, BN unfused)."""
    hp = jax.lax.Precision.HIGHEST
    x0 = embed_x
    xl = x0
    for i in range(cross_w.shape[0]):
        xw = jnp.dot(xl, cross_w[i][:, None], precision=hp)
        xl = x0 * xw + cross_b[i][None, :] + xl
    h = x0
    for (W, b, g, beta, mean, var) in mlp_params:
        h = jnp.dot(h, W, precision=hp) + b
        h = (h - mean) * g / jnp.sqrt(var + BN_EPS) + beta
        h = jnp.maximum(h, 0.0)
    stacked = jnp.concatenate([xl, h], axis=1)
    y = jnp.dot(stacked, lr_w, precision=hp) + lr_b[0, 0]
    return jax.nn.sigmoid(y[:, 0])


if __name__ == "__main__":
    # ---- synthetic "features": 4 sparse features, vocab 20, embed_dim 8 ----
    B = 2000               # NOT a multiple of tb -> exercises the padded trailing tile
    F = 4                  # number of sparse features
    VOCAB = 20
    E = 8                  # embed_dim per feature
    D = F * E              # 32
    N_CROSS = 2
    MLP_DIMS = [32, 16]    # mlp_params["dims"]

    key = jax.random.PRNGKey(0)
    keys = jax.random.split(key, 24)

    tables = jax.random.normal(keys[0], (F, VOCAB, E), jnp.float32) * 0.1
    x_idx = jax.random.randint(keys[1], (B, F), 0, VOCAB, jnp.int32)

    cross_w = jax.random.uniform(keys[2], (N_CROSS, D), jnp.float32,
                                 -1.0 / jnp.sqrt(D), 1.0 / jnp.sqrt(D))
    cross_b = jax.random.uniform(keys[3], (N_CROSS, D), jnp.float32, -0.1, 0.1)

    # MLP params: per layer (W, b, gamma, beta, running_mean, running_var) with
    # non-trivial BN stats so the BN-folding path is actually exercised.
    mlp_params = []
    in_dim = D
    kidx = 4
    for out_dim in MLP_DIMS:
        bound = 1.0 / jnp.sqrt(in_dim)
        W = jax.random.uniform(keys[kidx], (in_dim, out_dim), jnp.float32, -bound, bound)
        b = jax.random.uniform(keys[kidx + 1], (1, out_dim), jnp.float32, -bound, bound)
        gamma = 1.0 + 0.1 * jax.random.normal(keys[kidx + 2], (1, out_dim), jnp.float32)
        beta = 0.1 * jax.random.normal(keys[kidx + 3], (1, out_dim), jnp.float32)
        rmean = 0.1 * jax.random.normal(keys[kidx + 4], (1, out_dim), jnp.float32)
        rvar = jax.random.uniform(keys[kidx + 5], (1, out_dim), jnp.float32, 0.5, 1.5)
        mlp_params.append((W, b, gamma, beta, rmean, rvar))
        in_dim = out_dim
        kidx += 6

    # LR params: Linear(D + MLP_DIMS[-1], 1, bias=True)
    lr_in = D + MLP_DIMS[-1]
    bound = 1.0 / jnp.sqrt(lr_in)
    lr_w = jax.random.uniform(keys[kidx], (lr_in, 1), jnp.float32, -bound, bound)
    lr_b = jax.random.uniform(keys[kidx + 1], (1, 1), jnp.float32, -bound, bound)

    # Reference path: ordinary XLA embedding lookup + unfused BN math.
    embed_x = jnp.concatenate([tables[f][x_idx[:, f]] for f in range(F)], axis=1)
    ref = dcn_reference(embed_x, cross_w, cross_b, mlp_params, lr_w, lr_b)

    # Kernel: tb=1024 requested, capped to 256 here so the grid has 8 steps
    # (>= 4 pipelined steps per v7x TensorCore).
    out = dcn_pallas(x_idx, tables, cross_w, cross_b, mlp_params, lr_w, lr_b,
                     tb=1024)
    out = jax.block_until_ready(out)
    assert out.shape == (B,)
    # Tolerance covers MXU f32 matmul pass differences (kernel) vs the exact
    # reference; genuine layout/semantics bugs would be orders of magnitude larger.
    max_err = float(jnp.max(jnp.abs(out - ref)))
    assert jnp.allclose(out, ref, rtol=2e-3, atol=2e-3), max_err

    print("KERNEL_OK")
</pallas_src>

<mosaic_0001>
module attributes {stable_mosaic.version = 11 : i64} {
  func.func @kernel(%arg0: i32, %arg1: memref<4x256xi32, #tpu.memory_space<vmem>>, %arg2: memref<4x8x24xf32, #tpu.memory_space<vmem>>, %arg3: memref<32x2xf32, #tpu.memory_space<vmem>>, %arg4: memref<32x2xf32, #tpu.memory_space<vmem>>, %arg5: memref<32x32xf32, #tpu.memory_space<vmem>>, %arg6: memref<32x1xf32, #tpu.memory_space<vmem>>, %arg7: memref<16x32xf32, #tpu.memory_space<vmem>>, %arg8: memref<16x1xf32, #tpu.memory_space<vmem>>, %arg9: memref<32x1xf32, #tpu.memory_space<vmem>>, %arg10: memref<16x1xf32, #tpu.memory_space<vmem>>, %arg11: memref<1x1xf32, #tpu.memory_space<smem>>, %arg12: memref<1x256xf32, #tpu.memory_space<vmem>>) attributes {dimension_semantics = [#tpu.dimension_semantics<parallel>], iteration_bounds = array<i64: 8>, scalar_prefetch = 0 : i64, scratch_operands = 0 : i64, tpu.core_type = #tpu.core_type<tc>, window_params = [{transform_indices = @transform_0, window_bounds = array<i64: 4, 256>}, {pipeline_mode = #tpu.pipeline_mode<synchronous>, transform_indices = @transform_1, window_bounds = array<i64: 4, 8, 24>}, {pipeline_mode = #tpu.pipeline_mode<synchronous>, transform_indices = @transform_2, window_bounds = array<i64: 32, 2>}, {pipeline_mode = #tpu.pipeline_mode<synchronous>, transform_indices = @transform_3, window_bounds = array<i64: 32, 2>}, {pipeline_mode = #tpu.pipeline_mode<synchronous>, transform_indices = @transform_4, window_bounds = array<i64: 32, 32>}, {pipeline_mode = #tpu.pipeline_mode<synchronous>, transform_indices = @transform_5, window_bounds = array<i64: 32, 1>}, {pipeline_mode = #tpu.pipeline_mode<synchronous>, transform_indices = @transform_6, window_bounds = array<i64: 16, 32>}, {pipeline_mode = #tpu.pipeline_mode<synchronous>, transform_indices = @transform_7, window_bounds = array<i64: 16, 1>}, {pipeline_mode = #tpu.pipeline_mode<synchronous>, transform_indices = @transform_8, window_bounds = array<i64: 32, 1>}, {pipeline_mode = #tpu.pipeline_mode<synchronous>, transform_indices = @transform_9, window_bounds = array<i64: 16, 1>}, {transform_indices = @transform_10, window_bounds = array<i64: 1, 1>}, {transform_indices = @transform_11, window_bounds = array<i64: 1, 256>}]} {
    %0 = tpu.iota {dimensions = array<i32: 0>} : vector<24x256xi32>
    %c0 = arith.constant 0 : index
    %c0_0 = arith.constant 0 : index
    %1 = vector.load %arg1[%c0, %c0_0] : memref<4x256xi32, #tpu.memory_space<vmem>>, vector<1x256xi32>
    %2 = vector.broadcast %1 : vector<1x256xi32> to vector<24x256xi32>
    %3 = arith.cmpi eq, %0, %2 : vector<24x256xi32>
    %4 = arith.extui %3 : vector<24x256xi1> to vector<24x256xi32>
    %5 = arith.sitofp %4 : vector<24x256xi32> to vector<24x256xf32>
    %c0_1 = arith.constant 0 : index
    %c0_2 = arith.constant 0 : index
    %c0_3 = arith.constant 0 : index
    %6 = vector.load %arg2[%c0_1, %c0_2, %c0_3] : memref<4x8x24xf32, #tpu.memory_space<vmem>>, vector<1x8x24xf32>
    %7 = vector.shape_cast %6 : vector<1x8x24xf32> to vector<8x24xf32>
    %cst = arith.constant dense<0.000000e+00> : vector<8x256xf32>
    %8 = tpu.matmul %7, %5, %cst {dimension_numbers = #tpu.dot_dimension_numbers<[1], [0], [0], [1], [0, 0, 1, 1], [], []>} : vector<8x24xf32>, vector<24x256xf32>, vector<8x256xf32> -> vector<8x256xf32>
    %c1 = arith.constant 1 : index
    %c0_4 = arith.constant 0 : index
    %9 = vector.load %arg1[%c1, %c0_4] : memref<4x256xi32, #tpu.memory_space<vmem>>, vector<1x256xi32>
    %10 = vector.broadcast %9 : vector<1x256xi32> to vector<24x256xi32>
    %11 = arith.cmpi eq, %0, %10 : vector<24x256xi32>
    %12 = arith.extui %11 : vector<24x256xi1> to vector<24x256xi32>
    %13 = arith.sitofp %12 : vector<24x256xi32> to vector<24x256xf32>
    %c1_5 = arith.constant 1 : index
    %c0_6 = arith.constant 0 : index
    %c0_7 = arith.constant 0 : index
    %14 = vector.load %arg2[%c1_5, %c0_6, %c0_7] : memref<4x8x24xf32, #tpu.memory_space<vmem>>, vector<1x8x24xf32>
    %15 = vector.shape_cast %14 : vector<1x8x24xf32> to vector<8x24xf32>
    %cst_8 = arith.constant dense<0.000000e+00> : vector<8x256xf32>
    %16 = tpu.matmul %15, %13, %cst_8 {dimension_numbers = #tpu.dot_dimension_numbers<[1], [0], [0], [1], [0, 0, 1, 1], [], []>} : vector<8x24xf32>, vector<24x256xf32>, vector<8x256xf32> -> vector<8x256xf32>
    %c2 = arith.constant 2 : index
    %c0_9 = arith.constant 0 : index
    %17 = vector.load %arg1[%c2, %c0_9] : memref<4x256xi32, #tpu.memory_space<vmem>>, vector<1x256xi32>
    %18 = vector.broadcast %17 : vector<1x256xi32> to vector<24x256xi32>
    %19 = arith.cmpi eq, %0, %18 : vector<24x256xi32>
    %20 = arith.extui %19 : vector<24x256xi1> to vector<24x256xi32>
    %21 = arith.sitofp %20 : vector<24x256xi32> to vector<24x256xf32>
    %c2_10 = arith.constant 2 : index
    %c0_11 = arith.constant 0 : index
    %c0_12 = arith.constant 0 : index
    %22 = vector.load %arg2[%c2_10, %c0_11, %c0_12] : memref<4x8x24xf32, #tpu.memory_space<vmem>>, vector<1x8x24xf32>
    %23 = vector.shape_cast %22 : vector<1x8x24xf32> to vector<8x24xf32>
    %cst_13 = arith.constant dense<0.000000e+00> : vector<8x256xf32>
    %24 = tpu.matmul %23, %21, %cst_13 {dimension_numbers = #tpu.dot_dimension_numbers<[1], [0], [0], [1], [0, 0, 1, 1], [], []>} : vector<8x24xf32>, vector<24x256xf32>, vector<8x256xf32> -> vector<8x256xf32>
    %c3 = arith.constant 3 : index
    %c0_14 = arith.constant 0 : index
    %25 = vector.load %arg1[%c3, %c0_14] : memref<4x256xi32, #tpu.memory_space<vmem>>, vector<1x256xi32>
    %26 = vector.broadcast %25 : vector<1x256xi32> to vector<24x256xi32>
    %27 = arith.cmpi eq, %0, %26 : vector<24x256xi32>
    %28 = arith.extui %27 : vector<24x256xi1> to vector<24x256xi32>
    %29 = arith.sitofp %28 : vector<24x256xi32> to vector<24x256xf32>
    %c3_15 = arith.constant 3 : index
    %c0_16 = arith.constant 0 : index
    %c0_17 = arith.constant 0 : index
    %30 = vector.load %arg2[%c3_15, %c0_16, %c0_17] : memref<4x8x24xf32, #tpu.memory_space<vmem>>, vector<1x8x24xf32>
    %31 = vector.shape_cast %30 : vector<1x8x24xf32> to vector<8x24xf32>
    %cst_18 = arith.constant dense<0.000000e+00> : vector<8x256xf32>
    %32 = tpu.matmul %31, %29, %cst_18 {dimension_numbers = #tpu.dot_dimension_numbers<[1], [0], [0], [1], [0, 0, 1, 1], [], []>} : vector<8x24xf32>, vector<24x256xf32>, vector<8x256xf32> -> vector<8x256xf32>
    %33 = tpu.concatenate %8, %16, %24, %32 in 0 : vector<8x256xf32>, vector<8x256xf32>, vector<8x256xf32>, vector<8x256xf32> -> vector<32x256xf32>
    %c0_19 = arith.constant 0 : index
    %c0_20 = arith.constant 0 : index
    %34 = vector.load %arg3[%c0_19, %c0_20] : memref<32x2xf32, #tpu.memory_space<vmem>>, vector<32x1xf32>
    %c0_21 = arith.constant 0 : index
    %c0_22 = arith.constant 0 : index
    %35 = vector.load %arg4[%c0_21, %c0_22] : memref<32x2xf32, #tpu.memory_space<vmem>>, vector<32x1xf32>
    %36 = vector.broadcast %34 : vector<32x1xf32> to vector<32x256xf32>
    %37 = arith.mulf %33, %36 : vector<32x256xf32>
    %cst_23 = arith.constant dense<0.000000e+00> : vector<256xf32>
    %38 = vector.multi_reduction <add>, %37, %cst_23 [0] : vector<32x256xf32> to vector<256xf32>
    %39 = vector.shape_cast %38 : vector<256xf32> to vector<1x256xf32>
    %40 = vector.broadcast %39 : vector<1x256xf32> to vector<32x256xf32>
    %41 = arith.mulf %33, %40 : vector<32x256xf32>
    %42 = vector.broadcast %35 : vector<32x1xf32> to vector<32x256xf32>
    %43 = arith.addf %41, %42 : vector<32x256xf32>
    %44 = arith.addf %43, %33 : vector<32x256xf32>
    %c0_24 = arith.constant 0 : index
    %c1_25 = arith.constant 1 : index
    %45 = vector.load %arg3[%c0_24, %c1_25] : memref<32x2xf32, #tpu.memory_space<vmem>>, vector<32x1xf32>
    %c0_26 = arith.constant 0 : index
    %c1_27 = arith.constant 1 : index
    %46 = vector.load %arg4[%c0_26, %c1_27] : memref<32x2xf32, #tpu.memory_space<vmem>>, vector<32x1xf32>
    %47 = vector.broadcast %45 : vector<32x1xf32> to vector<32x256xf32>
    %48 = arith.mulf %44, %47 : vector<32x256xf32>
    %cst_28 = arith.constant dense<0.000000e+00> : vector<256xf32>
    %49 = vector.multi_reduction <add>, %48, %cst_28 [0] : vector<32x256xf32> to vector<256xf32>
    %50 = vector.shape_cast %49 : vector<256xf32> to vector<1x256xf32>
    %51 = vector.broadcast %50 : vector<1x256xf32> to vector<32x256xf32>
    %52 = arith.mulf %33, %51 : vector<32x256xf32>
    %53 = vector.broadcast %46 : vector<32x1xf32> to vector<32x256xf32>
    %54 = arith.addf %52, %53 : vector<32x256xf32>
    %55 = arith.addf %54, %44 : vector<32x256xf32>
    %c0_29 = arith.constant 0 : index
    %c0_30 = arith.constant 0 : index
    %56 = vector.load %arg5[%c0_29, %c0_30] : memref<32x32xf32, #tpu.memory_space<vmem>>, vector<32x32xf32>
    %cst_31 = arith.constant dense<0.000000e+00> : vector<32x256xf32>
    %57 = tpu.matmul %56, %33, %cst_31 {dimension_numbers = #tpu.dot_dimension_numbers<[1], [0], [0], [1], [0, 0, 1, 1], [], []>} : vector<32x32xf32>, vector<32x256xf32>, vector<32x256xf32> -> vector<32x256xf32>
    %c0_32 = arith.constant 0 : index
    %c0_33 = arith.constant 0 : index
    %58 = vector.load %arg6[%c0_32, %c0_33] : memref<32x1xf32, #tpu.memory_space<vmem>>, vector<32x1xf32>
    %59 = vector.broadcast %58 : vector<32x1xf32> to vector<32x256xf32>
    %60 = arith.addf %57, %59 : vector<32x256xf32>
    %cst_34 = arith.constant 0.000000e+00 : f32
    %61 = vector.broadcast %cst_34 : f32 to vector<32x256xf32>
    %62 = arith.maximumf %60, %61 : vector<32x256xf32>
    %c0_35 = arith.constant 0 : index
    %c0_36 = arith.constant 0 : index
    %63 = vector.load %arg7[%c0_35, %c0_36] : memref<16x32xf32, #tpu.memory_space<vmem>>, vector<16x32xf32>
    %cst_37 = arith.constant dense<0.000000e+00> : vector<16x256xf32>
    %64 = tpu.matmul %63, %62, %cst_37 {dimension_numbers = #tpu.dot_dimension_numbers<[1], [0], [0], [1], [0, 0, 1, 1], [], []>} : vector<16x32xf32>, vector<32x256xf32>, vector<16x256xf32> -> vector<16x256xf32>
    %c0_38 = arith.constant 0 : index
    %c0_39 = arith.constant 0 : index
    %65 = vector.load %arg8[%c0_38, %c0_39] : memref<16x1xf32, #tpu.memory_space<vmem>>, vector<16x1xf32>
    %66 = vector.broadcast %65 : vector<16x1xf32> to vector<16x256xf32>
    %67 = arith.addf %64, %66 : vector<16x256xf32>
    %cst_40 = arith.constant 0.000000e+00 : f32
    %68 = vector.broadcast %cst_40 : f32 to vector<16x256xf32>
    %69 = arith.maximumf %67, %68 : vector<16x256xf32>
    %c0_41 = arith.constant 0 : index
    %c0_42 = arith.constant 0 : index
    %70 = vector.load %arg9[%c0_41, %c0_42] : memref<32x1xf32, #tpu.memory_space<vmem>>, vector<32x1xf32>
    %71 = vector.broadcast %70 : vector<32x1xf32> to vector<32x256xf32>
    %72 = arith.mulf %55, %71 : vector<32x256xf32>
    %cst_43 = arith.constant dense<0.000000e+00> : vector<256xf32>
    %73 = vector.multi_reduction <add>, %72, %cst_43 [0] : vector<32x256xf32> to vector<256xf32>
    %74 = vector.shape_cast %73 : vector<256xf32> to vector<1x256xf32>
    %c0_44 = arith.constant 0 : index
    %c0_45 = arith.constant 0 : index
    %75 = vector.load %arg10[%c0_44, %c0_45] : memref<16x1xf32, #tpu.memory_space<vmem>>, vector<16x1xf32>
    %76 = vector.broadcast %75 : vector<16x1xf32> to vector<16x256xf32>
    %77 = arith.mulf %69, %76 : vector<16x256xf32>
    %cst_46 = arith.constant dense<0.000000e+00> : vector<256xf32>
    %78 = vector.multi_reduction <add>, %77, %cst_46 [0] : vector<16x256xf32> to vector<256xf32>
    %79 = vector.shape_cast %78 : vector<256xf32> to vector<1x256xf32>
    %80 = arith.addf %74, %79 : vector<1x256xf32>
    %c0_47 = arith.constant 0 : index
    %c0_48 = arith.constant 0 : index
    %81 = memref.load %arg11[%c0_47, %c0_48] : memref<1x1xf32, #tpu.memory_space<smem>>
    %82 = vector.broadcast %81 : f32 to vector<1x256xf32>
    %83 = arith.addf %80, %82 : vector<1x256xf32>
    %84 = arith.negf %83 : vector<1x256xf32>
    %85 = math.exp %84 : vector<1x256xf32>
    %cst_49 = arith.constant 1.000000e+00 : f32
    %86 = vector.broadcast %cst_49 : f32 to vector<1x256xf32>
    %87 = arith.addf %86, %85 : vector<1x256xf32>
    %88 = arith.divf %86, %87 : vector<1x256xf32>
    %c0_50 = arith.constant 0 : index
    %c0_51 = arith.constant 0 : index
    %89 = vector.load %arg12[%c0_50, %c0_51] : memref<1x256xf32, #tpu.memory_space<vmem>>, vector<1x256xf32>
    tpu.vector_store %arg12[%c0_50, %c0_51], %88 {strides = array<i32>} : memref<1x256xf32, #tpu.memory_space<vmem>>, vector<1x256xf32>,
    return
  }
  func.func @transform_0(%arg0: i32) -> (i32, i32) {
    %c0_i32 = arith.constant 0 : i32
    %c0_i32_0 = arith.constant 0 : i32
    return %c0_i32, %arg0 : i32, i32
  }
  func.func @transform_1(%arg0: i32) -> (i32, i32, i32) {
    %c0_i32 = arith.constant 0 : i32
    %c0_i32_0 = arith.constant 0 : i32
    %c0_i32_1 = arith.constant 0 : i32
    %c0_i32_2 = arith.constant 0 : i32
    return %c0_i32, %c0_i32_0, %c0_i32_1 : i32, i32, i32
  }
  func.func @transform_2(%arg0: i32) -> (i32, i32) {
    %c0_i32 = arith.constant 0 : i32
    %c0_i32_0 = arith.constant 0 : i32
    %c0_i32_1 = arith.constant 0 : i32
    return %c0_i32, %c0_i32_0 : i32, i32
  }
  func.func @transform_3(%arg0: i32) -> (i32, i32) {
    %c0_i32 = arith.constant 0 : i32
    %c0_i32_0 = arith.constant 0 : i32
    %c0_i32_1 = arith.constant 0 : i32
    return %c0_i32, %c0_i32_0 : i32, i32
  }
  func.func @transform_4(%arg0: i32) -> (i32, i32) {
    %c0_i32 = arith.constant 0 : i32
    %c0_i32_0 = arith.constant 0 : i32
    %c0_i32_1 = arith.constant 0 : i32
    return %c0_i32, %c0_i32_0 : i32, i32
  }
  func.func @transform_5(%arg0: i32) -> (i32, i32) {
    %c0_i32 = arith.constant 0 : i32
    %c0_i32_0 = arith.constant 0 : i32
    %c0_i32_1 = arith.constant 0 : i32
    return %c0_i32, %c0_i32_0 : i32, i32
  }
  func.func @transform_6(%arg0: i32) -> (i32, i32) {
    %c0_i32 = arith.constant 0 : i32
    %c0_i32_0 = arith.constant 0 : i32
    %c0_i32_1 = arith.constant 0 : i32
    return %c0_i32, %c0_i32_0 : i32, i32
  }
  func.func @transform_7(%arg0: i32) -> (i32, i32) {
    %c0_i32 = arith.constant 0 : i32
    %c0_i32_0 = arith.constant 0 : i32
    %c0_i32_1 = arith.constant 0 : i32
    return %c0_i32, %c0_i32_0 : i32, i32
  }
  func.func @transform_8(%arg0: i32) -> (i32, i32) {
    %c0_i32 = arith.constant 0 : i32
    %c0_i32_0 = arith.constant 0 : i32
    %c0_i32_1 = arith.constant 0 : i32
    return %c0_i32, %c0_i32_0 : i32, i32
  }
  func.func @transform_9(%arg0: i32) -> (i32, i32) {
    %c0_i32 = arith.constant 0 : i32
    %c0_i32_0 = arith.constant 0 : i32
    %c0_i32_1 = arith.constant 0 : i32
    return %c0_i32, %c0_i32_0 : i32, i32
  }
  func.func @transform_10(%arg0: i32) -> (i32, i32) {
    %c0_i32 = arith.constant 0 : i32
    %c0_i32_0 = arith.constant 0 : i32
    %c0_i32_1 = arith.constant 0 : i32
    return %c0_i32, %c0_i32_0 : i32, i32
  }
  func.func @transform_11(%arg0: i32) -> (i32, i32) {
    %c0_i32 = arith.constant 0 : i32
    %c0_i32_0 = arith.constant 0 : i32
    return %c0_i32, %arg0 : i32, i32
  }
}

</mosaic_0001>

<bundles_post_ra>
// kernel: tpu_custom_call.1
= control target key start
LH: loop header
LB: loop body
LE: loop exit
PB: predicated region body
PF: predicated region fallthrough
CT: control target
= control target key end

     0   :  { %s2039_s0 = inlined_call_operand.vmem [shape: s32[4,2048], index: 0, kind: input, shape index: {}]   ;;  %s2040_s1 = inlined_call_operand.vmem [shape: f32[4,8,24], index: 1, kind: input, shape index: {}]   ;;  %s2041_s2 = inlined_call_operand.vmem [shape: f32[32,2], index: 2, kind: input, shape index: {}]   ;;  %s2042_s3 = inlined_call_operand.vmem [shape: f32[32,2], index: 3, kind: input, shape index: {}]   ;;  %s2043_s4 = inlined_call_operand.vmem [shape: f32[32,32], index: 4, kind: input, shape index: {}]   ;;  %s2044_s5 = inlined_call_operand.vmem [shape: f32[32,1], index: 5, kind: input, shape index: {}]   ;;  %s2045_s6 = inlined_call_operand.vmem [shape: f32[16,32], index: 6, kind: input, shape index: {}]   ;;  %s2046_s7 = inlined_call_operand.vmem [shape: f32[16,1], index: 7, kind: input, shape index: {}]   ;;  %s2047_s8 = inlined_call_operand.vmem [shape: f32[32,1], index: 8, kind: input, shape index: {}]   ;;  %s2048_s9 = inlined_call_operand.vmem [shape: f32[16,1], index: 9, kind: input, shape index: {}]   ;;  %s2049_s10 = inlined_call_operand.<no memory space> [shape: f32[1,1], index: 10, kind: input, shape index: {}]   ;;  %s2050_s11 = inlined_call_operand.hbm [shape: f32[1,2048], index: 11, kind: output, shape index: {}]  }
   0x1   :  { %2051 = sst [smem:[#allocation6_spill]] %s2039_s0 }
   0x2   :  { %16 = sst [smem:[#allocation2]] %s2049_s10 }
   0x3   :  { %17 = vsyncpa [#allocation4], 0 }
   0x4   :  { %19 = vsyncpa [#allocation4 + $0x1], 0  ;;  %s1690_s19 = smov 0   ;;  %s1692_s20 = smov 0  }
   0x5   :  { %s1694_s21 = smov 0   ;;  %s1696_s22 = smov 0  }
   0x6 LB: > { %s1711_s10 = sadd.s32 4294967295, %s1619_s22   ;;  %s1422_s23 = sadd.s32 4294967294, %s1619_s22   ;;  %s1619_s22 = sphi %s1696_s22, %s2058_s22   ;;  %s1615_s21 = sphi %s1694_s21, %s2057_s21   ;;  %s1611_s20 = sphi %s1692_s20, %s2056_s20   ;;  %s1607_s19 = sphi %s1690_s19, %s2055_s19  }
   0x7   : > { %s1715_s24 = sadd.s32 1, %s1619_s22   ;;  %s268_s25 = sadd.s32 1, %s1615_s21 }
   0x8   : > { %s265_s26 = ssub.s32 %s1619_s22, %s1715_s24  ;;  %p278_p0 = scmp.ne.s32.totalorder %s1615_s21, %s1611_s20 }
   0x9   : > { %p266_p1 = scmp.eq.s32.totalorder %s265_s26, 0  ;;  %p279_p2 = scmp.eq.s32.totalorder %s1711_s10, 7 }
   0xa   : > { %p284_p3 = scmp.ne.s32.totalorder %s1611_s20, %s1607_s19  ;;  %p285_p4 = scmp.eq.s32.totalorder %s1422_s23, 7 }
   0xb   : > { %s1726_s27 = scalar_select %p266_p1, %s1615_s21, %s268_s25  }
   0xc   : > { %p1728_p5 = por %p279_p2, %p278_p0  ;;  %p1732_p6 = por %p285_p4, %p284_p3 }
   0xd   : > { %p1425_p7 = scmp.ge.s32.totalorder %s1619_s22, 1  ;;  %p342_p8 = scmp.lt.s32.totalorder %s1619_s22, 9 }
   0xf   : > { %p343_p9 = pnand %p1425_p7, %p342_p8 }
  0x10   : > { %s1427_s30 = sshll.u32 (!%p343_p9), %s1711_s10, 1  ;;  %s2054_s0 = sld [smem:[#allocation6_spill]] (!%p343_p9) }
  0x11   : > { %346 = sbr.rel (%p343_p9) target bundleno = 745 (0x2e9), region = 64  ;;  %p383_p10 = scmp.lt.s32.totalorder (!%p343_p9), %s1427_s30, 15 }
  0x12   : > { %s1309_s26 = sld [smem:[#allocation2]] (!%p343_p9)  ;;  %s379_s12 = sand.u32 (!%p343_p9), 1, %s1611_s20  }
  0x13   : > { %s1349_s23 = scalar_lea.sflag (!%p343_p9), [#allocation4], %s379_s12 }
  0x16   : > { %v389_v0 = vlaneseq  ;;  %v1621_v1 = vmov 0.0   ;;  %v995_v2 = vld [vmem:[%s2044_s5 + $0x18] sm:$0xff]  ;;  %v1622_v4 = vmov 0   ;;  %v993_v5 = vld [vmem:[%s2044_s5 + $0x8] sm:$0xff]  ;;  %s2060_s30 = smov (!%p383_p10, %s1427_s30), 15  ;;  %v994_v8 = vld [vmem:[%s2044_s5 + $0x10] sm:$0xff] }
  0x17   : > { %489 = vmatprep.mubr.f32.mxu1 %v1621_v1  ;;  %697 = vmatprep.mubr.f32.mxu0 %v1621_v1  ;;  %v992_v9 = vld [vmem:[%s2044_s5] sm:$0xff]  ;;  %s1428_s25 = sshll.u32 %s2060_s30, 2  ;;  %v1623_v20 = vmov 1.0   ;;  %vm421_vm9 = vcmask 195584   ;;  %v1464_v26 = vld [vmem:[%s2040_s1 + $0x10] sm:$0xff]  ;;  %v1449_v28 = vld [vmem:[%s2040_s1 + $0x8] sm:$0xff] }
  0x18   : > { %v1745_v3 = vshrl.u32 %v389_v0, 7  ;;  %1545 = vset.pattern.permute.xlu0 %v1622_v4  ;;  %1546 = vset.pattern.permute.xlu1 %v1622_v4  ;;  %s386_s13 = scalar_lea.vmem %s2054_s0, %s1428_s25  ;;  %v420_v23 = vld [vmem:[%s2040_s1] sm:$0xff]  ;;  %v809_v29 = vld [vmem:[%s2041_s2 + $0x8] sm:$0xff]  ;;  %v810_v30 = vld [vmem:[%s2041_s2 + $0x10] sm:$0xff]  ;;  %v1624_v37 = vmov 1   ;;  %s1500_s30 = sshll.u32 %s1711_s10, 5 }
  0x19   : > { %1013 = vperm.xlu0 %1545, %v995_v2   ;;  %1003 = vperm.xlu1 %1546, %v993_v5   ;;  %v393_v12 = vld [vmem:[%s386_s13] ss:$4 sm:$0x3]  ;;  %v1442_v13 = vld [vmem:[%s386_s13 + $0x1] ss:$4 sm:$0x3]  ;;  %s1361_s18 = scalar_lea.hbm %s2050_s11, %s1500_s30 }
  0x1a   : > { %v400_v6 = vsub.s32 1, %v1745_v3  ;;  %v396_v7 = vsub.s32 0, %v1745_v3  ;;  %v1764_v10 = vadd.s32 16, %v1745_v3  ;;  %v1767_v11 = vadd.s32 8, %v1745_v3  ;;  %v808_v27 = vld [vmem:[%s2041_s2] sm:$0xff]  ;;  %v1479_v31 = vld [vmem:[%s2040_s1 + $0x18] sm:$0xff] }
  0x1b   : > { %v1457_v16 = vld [vmem:[%s386_s13 + $0x2] ss:$4 sm:$0x3]  ;;  %v1472_v22 = vld [vmem:[%s386_s13 + $0x3] ss:$4 sm:$0x3] }
  0x1c   : > { %v401_v14 = vrot.slane %v393_v12, %v400_v6  ;;  %v397_v15 = vrot.slane %v393_v12, %v396_v7  ;;  %v609_v17 = vrot.slane %v1457_v16, %v400_v6  ;;  %v605_v18 = vrot.slane %v1457_v16, %v396_v7  ;;  %v811_v32 = vld [vmem:[%s2041_s2 + $0x18] sm:$0xff]  ;;  %v812_v33 = vld [vmem:[%s2042_s3] sm:$0xff]  ;;  %v813_v34 = vld [vmem:[%s2042_s3 + $0x8] sm:$0xff]  ;;  %s1426_s13 = sshll.u32 %s379_s12, 1 }
  0x1d   : > { %1008 = vperm.xlu0 %1545, %v994_v8   ;;  %998 = vperm.xlu1 %1546, %v992_v9   ;;  %v505_v19 = vrot.slane %v1442_v13, %v400_v6  ;;  %v501_v21 = vrot.slane %v1442_v13, %v396_v7  ;;  %v713_v24 = vrot.slane %v1472_v22, %v400_v6  ;;  %v814_v35 = vld [vmem:[%s2042_s3 + $0x10] sm:$0xff]  ;;  %v815_v36 = vld [vmem:[%s2042_s3 + $0x18] sm:$0xff]  ;;  %v1129_v38 = vld [vmem:[%s2046_s7 + $0x8] sm:$0xff]  ;;  %s381_s14 = scalar_lea.vmem [#allocation3], %s1426_s13 }
  0x1e   : > { %vm407_vm0 = vcmp.eq.s32.totalorder %v1764_v10, %v401_v14  ;;  %vm406_vm1 = vcmp.eq.s32.totalorder %v1764_v10, %v397_v15  ;;  %vm405_vm2 = vcmp.eq.s32.totalorder %v1767_v11, %v401_v14  ;;  %vm404_vm3 = vcmp.eq.s32.totalorder %v1767_v11, %v397_v15  ;;  %v1128_v39 = vld [vmem:[%s2046_s7] sm:$0xff]  ;;  %v1229_v40 = vld [vmem:[%s2047_s8 + $0x10] sm:$0xff]  ;;  %v1228_v42 = vld [vmem:[%s2047_s8 + $0x8] sm:$0xff]  ;;  %s1363_s15 = sshll.u32 %s381_s14, 4  ;;  %s1364_s15 = int_to_ptr.vmem [resolvable:$true] %s1363_s15 }
  0x1f   : > { %1435 = vmatprep.subr.msk.mxu1 %vm407_vm0, %v1623_v20  ;;  %vm403_vm4 = vcmp.eq.s32.totalorder %v1745_v3, %v401_v14  ;;  %vm615_vm5 = vcmp.eq.s32.totalorder %v1764_v10, %v609_v17  ;;  %vm614_vm6 = vcmp.eq.s32.totalorder %v1764_v10, %v605_v18  ;;  %vm402_vm7 = vcmp.eq.s32.totalorder %v1745_v3, %v397_v15  ;;  %v1227_v41 = vld [vmem:[%s2047_s8] sm:$0xff]  ;;  %v1230_v43 = vld [vmem:[%s2047_s8 + $0x18] sm:$0xff]  ;;  %s1559_s25 = scalar_lea.vmem %s1364_s15, 32 }
  0x20   : > { %1436 = vmatpush1.msk.msra.mxu1 %vm406_vm1, %v1623_v20  ;;  %1465 = vmatprep.subr.msk.mxu0 %vm615_vm5, %v1623_v20  ;;  %vm613_vm8 = vcmp.eq.s32.totalorder %v1767_v11, %v609_v17  ;;  %vm511_vm10 = vcmp.eq.s32.totalorder %v1764_v10, %v505_v19  ;;  %vm612_vm11 = vcmp.eq.s32.totalorder %v1767_v11, %v605_v18  ;;  %p1560_p11 = scmp.ne.s32.totalorder %s1364_s15, %s1559_s25 }
  0x21   : > { %1437 = vmatprep.subr.msk.mxu1 %vm405_vm2, %v1623_v20  ;;  %1466 = vmatpush1.msk.msra.mxu0 %vm614_vm6, %v1623_v20  ;;  %vm510_vm12 = vcmp.eq.s32.totalorder %v1764_v10, %v501_v21  ;;  %vm509_vm13 = vcmp.eq.s32.totalorder %v1767_v11, %v505_v19  ;;  %vm611_vm14 = vcmp.eq.s32.totalorder %v1745_v3, %v609_v17 }
  0x22   : > { %1438 = vmatpush1.msk.msra.mxu1 %vm404_vm3, %v1623_v20  ;;  %1467 = vmatprep.subr.msk.mxu0 %vm613_vm8, %v1623_v20  ;;  %vm508_vm15 = vcmp.eq.s32.totalorder %v1767_v11, %v501_v21  ;;  %v709_v25 = vrot.slane %v1472_v22, %v396_v7  ;;  %vm610_vm0 = vcmp.eq.s32.totalorder %v1745_v3, %v605_v18  ;;  %p1561_p12 = pnand %p1560_p11, %p1728_p5 }
  0x23   : > { %1439 = vmatprep.subr.msk.mxu1 %vm403_vm4, %v1623_v20  ;;  %1468 = vmatpush1.msk.msra.mxu0 %vm612_vm11, %v1623_v20  ;;  %vm507_vm1 = vcmp.eq.s32.totalorder %v1745_v3, %v505_v19  ;;  %vm506_vm2 = vcmp.eq.s32.totalorder %v1745_v3, %v501_v21  ;;  %vm719_vm3 = vcmp.eq.s32.totalorder %v1764_v10, %v713_v24  ;;  %v988_v19 = vld [vmem:[%s2043_s4] sm:$0xff] }
  0x24   : > { %1440 = vmatpush1.msk.msra.mxu1 %vm402_vm7, %v1623_v20  ;;  %1469 = vmatprep.subr.msk.mxu0 %vm611_vm14, %v1623_v20  ;;  %vm718_vm4 = vcmp.eq.s32.totalorder %v1764_v10, %v709_v25  ;;  %vm717_vm5 = vcmp.eq.s32.totalorder %v1767_v11, %v713_v24  ;;  %vm716_vm6 = vcmp.eq.s32.totalorder %v1767_v11, %v709_v25  ;;  %p1562_p13 = pneg %p1561_p12 }
  0x25   : > { %1441 = vmatmul.mubr.msk.f32.vlgmr.msra.gmra.mxu1 %vm421_vm9, %v420_v23  ;;  %1450 = vmatprep.subr.msk.mxu1 %vm511_vm10, %v1623_v20  ;;  %vm715_vm7 = vcmp.eq.s32.totalorder %v1745_v3, %v713_v24  ;;  %vm714_vm8 = vcmp.eq.s32.totalorder %v1745_v3, %v709_v25  ;;  %vm1345_vm10 = vcmp.lt.s32.totalorder %v389_v0, 256 }
  0x26   : > { %1451 = vmatpush1.msk.msra.mxu1 %vm510_vm12, %v1623_v20  ;;  %593 = vmatprep.mubr.f32.mxu1 %v1621_v1 }
  0x27   : > { %1452 = vmatprep.subr.msk.mxu1 %vm509_vm13, %v1623_v20  ;;  %1470 = vmatpush1.msk.msra.mxu0 %vm610_vm0, %v1623_v20 }
  0x28   : > { %1453 = vmatpush1.msk.msra.mxu1 %vm508_vm15, %v1623_v20  ;;  %1471 = vmatmul.mubr.msk.f32.vlgmr.msra.gmra.mxu0 %vm421_vm9, %v1464_v26  ;;  %v989_v26 = vld [vmem:[%s2043_s4 + $0x8] sm:$0xff] }
  0x29   : > { %1454 = vmatprep.subr.msk.mxu1 %vm507_vm1, %v1623_v20  ;;  %818 = vperm.xlu0 %1545, %v808_v27  }
  0x2a   : > { %1455 = vmatpush1.msk.msra.mxu1 %vm506_vm2, %v1623_v20  ;;  %823 = vperm.xlu1 %1546, %v809_v29  }
  0x2b   : > { %1456 = vmatmul.mubr.msk.f32.vlgmr.msra.gmra.mxu1 %vm421_vm9, %v1449_v28  ;;  %1480 = vmatprep.subr.msk.mxu1 %vm719_vm3, %v1623_v20 }
  0x2c   : > { %1481 = vmatpush1.msk.msra.mxu1 %vm718_vm4, %v1623_v20  ;;  %801 = vmatprep.mubr.f32.mxu1 %v1621_v1 }
  0x2d   : > { %1482 = vmatprep.subr.msk.mxu1 %vm717_vm5, %v1623_v20  ;;  %828 = vperm.xlu0 %1545, %v810_v30  }
  0x2e   : > { %1483 = vmatpush1.msk.msra.mxu1 %vm716_vm6, %v1623_v20  ;;  %1093 = vmatprep.mubr.f32.mxu0 %v1621_v1 }
  0x2f   : > { %1484 = vmatprep.subr.msk.mxu1 %vm715_vm7, %v1623_v20  ;;  %833 = vperm.xlu1 %1546, %v811_v32  }
  0x30   : > { %1485 = vmatpush1.msk.msra.mxu1 %vm714_vm8, %v1623_v20 }
  0x31   : > { %1486 = vmatmul.mubr.msk.f32.vlgmr.msra.gmra.mxu1 %vm421_vm9, %v1479_v31  ;;  %872 = vperm.xlu0 %1545, %v812_v33   ;;  %vm1016_vm9 = vcmask 261120   ;;  %v990_v31 = vld [vmem:[%s2043_s4 + $0x10] sm:$0xff] }
  0x32   : > { %1210 = vmatprep.mubr.f32.mxu1 %v1621_v1 }
  0x33   : > { %877 = vperm.xlu1 %1546, %v813_v34  }
  0x35   : > { %882 = vperm.xlu0 %1545, %v814_v35  }
  0x37   : > { %887 = vperm.xlu1 %1546, %v815_v36  }
  0x39   : > { %1547 = vset.pattern.permute.xlu0 %v1624_v37 }
  0x3a   : > { %907 = vperm.xlu0 %1547, %v808_v27  }
  0x3b   : > { %1548 = vset.pattern.permute.xlu1 %v1624_v37 }
  0x3c   : > { %911 = vperm.xlu1 %1548, %v809_v29  }
  0x3e   : > { %919 = vperm.xlu0 %1547, %v811_v32  }
  0x40   : > { %915 = vperm.xlu1 %1548, %v810_v30  }
  0x42   : > { %961 = vperm.xlu0 %1547, %v813_v34  }
  0x44   : > { %957 = vperm.xlu1 %1548, %v812_v33  }
  0x46   : > { %969 = vperm.xlu0 %1547, %v815_v36  }
  0x48   : > { %965 = vperm.xlu1 %1548, %v814_v35  }
  0x4a   : > { %1550 = vset.pattern.permute.xlu0 %v1622_v4 }
  0x4b   : > { %1137 = vperm.xlu0 %1550, %v1129_v38  }
  0x4c   : > { %1549 = vset.pattern.permute.xlu1 %v1622_v4 }
  0x4d   : > { %1132 = vperm.xlu1 %1549, %v1128_v39  }
  0x4f   : > { %1243 = vperm.xlu0 %1550, %v1229_v40  }
  0x51   : > { %1233 = vperm.xlu1 %1549, %v1227_v41  }
  0x55   : > { %1238 = vperm.xlu1 %1549, %v1228_v42  }
  0x59   : > { %1248 = vperm.xlu1 %1549, %v1230_v43  }
  0x94   : > { %v1881_v44 = vpop.permute.xlu0 %1013  ;;  %v1883_v45 = vpop.permute.xlu1 %1003 }
  0x98   : > { %v1885_v46 = vpop.permute.xlu0 %1008  ;;  %v1887_v47 = vpop.permute.xlu1 %998 }
  0xa4   : > { %v819_v48 = vpop.permute.xlu0 %818 }
  0xa5   : > { %v824_v50 = vpop.permute.xlu1 %823 }
  0xa8   : > { %v829_v51 = vpop.permute.xlu0 %828 }
  0xaa   : > { %v834_v58 = vpop.permute.xlu1 %833 }
  0xac   : > { %v873_v16 = vpop.permute.xlu0 %872 }
  0xae   : > { %v878_v6 = vpop.permute.xlu1 %877 }
  0xb0   : > { %v883_v25 = vpop.permute.xlu0 %882 }
  0xb2   : > { %v888_v15 = vpop.permute.xlu1 %887 }
  0xb5   : > { %v908_v38 = vpop.permute.xlu0 %907 }
  0xb7   : > { %v912_v24 = vpop.permute.xlu1 %911 }
  0xbb   : > { %v916_v36 = vpop.permute.xlu1 %915 }
  0xe5   : > { %v1889_v49 = vpop.f32.mrf.mxu1 }
  0xe6   : > { %v836_v55 = vmul.f32 %v819_v48, %v1889_v49 }
  0xe7   : > { %v1891_v52 = vpop.f32.mrf.mxu1 }
  0xe8   : > { %v1893_v53 = vpop.f32.mrf.mxu0  ;;  %v837_v61 = vmul.f32 %v819_v48, %v1891_v52 }
  0xe9   : > { %v840_v57 = vmul.f32 %v829_v51, %v1893_v53 }
  0xea   : > { %v1902_v60 = vpop.f32.mrf.mxu0 }
  0xeb   : > { %v1895_v54 = vpop.f32.mrf.mxu1  ;;  %v841_v5 = vmul.f32 %v829_v51, %v1902_v60 }
  0xec   : > { %v838_v56 = vmul.f32 %v824_v50, %v1895_v54 }
  0xed   : > { %v1900_v59 = vpop.f32.mrf.mxu1 }
  0xee   : > { %v844_v62 = vadd.f32 %v838_v56, %v836_v55  ;;  %v839_v63 = vmul.f32 %v824_v50, %v1900_v59  ;;  %v991_v55 = vld [vmem:[%s2043_s4 + $0x18] sm:$0xff] }
  0xf0   : > { %v853_v2 = vadd.f32 %v839_v63, %v837_v61  ;;  %v845_v4 = vadd.f32 %v844_v62, %v840_v57  ;;  %v958_v62 = vpop.permute.xlu1 %957 }
  0xf1   : > { %v1907_v7 = vpop.f32.mrf.mxu1 }
  0xf2   : > { %v842_v8 = vmul.f32 %v834_v58, %v1907_v7  ;;  %v854_v10 = vadd.f32 %v853_v2, %v841_v5 }
  0xf3   : > { %v1910_v9 = vpop.f32.mrf.mxu1 }
  0xf4   : > { %v846_v11 = vadd.f32 %v845_v4, %v842_v8  ;;  %v843_v12 = vmul.f32 %v834_v58, %v1910_v9  ;;  %1053 = vmatprep.subr.mxu0 %v1910_v9 }
  0xf5   : > { %1054 = vmatpush1.msra.mxu0 %v1907_v7 }
  0xf6   : > { %v847_v13 = vrot.slane %v846_v11, 4  ;;  %v855_v14 = vadd.f32 %v854_v10, %v843_v12  ;;  %1055 = vmatprep.subr.mxu0 %v1902_v60 }
  0xf7   : > { %1056 = vmatpush1.msra.mxu0 %v1893_v53 }
  0xf8   : > { %v848_v17 = vadd.f32 %v847_v13, %v846_v11  ;;  %v856_v18 = vrot.slane %v855_v14, 4  ;;  %1057 = vmatprep.subr.mxu0 %v1900_v59 }
  0xf9   : > { %1058 = vmatpush1.msra.mxu0 %v1895_v54 }
  0xfa   : > { %v849_v20 = vrot.slane %v848_v17, 2  ;;  %v857_v21 = vadd.f32 %v856_v18, %v855_v14  ;;  %1059 = vmatprep.subr.mxu0 %v1891_v52  ;;  %v920_v14 = vpop.permute.xlu0 %919 }
  0xfb   : > { %1060 = vmatpush1.msra.mxu0 %v1889_v49 }
  0xfc   : > { %v858_v22 = vrot.slane %v857_v21, 2  ;;  %v850_v23 = vadd.f32 %v849_v20, %v848_v17  ;;  %1487 = vmatmul.mubr.msk.f32.vlgmr.msra.gmra.mxu0 %vm1016_vm9, %v988_v19 }
  0xfd   : > { %1099 = vmatprep.mubr.f32.mxu0 %v1621_v1 }
  0xfe   : > { %v851_v27 = vrot.slane %v850_v23, 1  ;;  %v859_v28 = vadd.f32 %v858_v22, %v857_v21 }
 0x100   : > { %v852_v29 = vadd.f32 %v851_v27, %v850_v23  ;;  %v860_v30 = vrot.slane %v859_v28, 1  ;;  %1488 = vmatmul.mubr.msk.f32.gmra.mxu0 %vm1016_vm9, %v989_v26  ;;  %v966_v23 = vpop.permute.xlu1 %965 }
 0x101   : > { %1105 = vmatprep.mubr.f32.mxu0 %v1621_v1 }
 0x102   : > { %v861_v32 = vadd.f32 %v860_v30, %v859_v28  ;;  %v864_v33 = vmul.f32 %v852_v29, %v1895_v54  ;;  %v862_v34 = vmul.f32 %v852_v29, %v1889_v49  ;;  %v868_v35 = vmul.f32 %v852_v29, %v1907_v7  ;;  %v962_v30 = vpop.permute.xlu0 %961 }
 0x103   : > { %v866_v37 = vmul.f32 %v852_v29, %v1893_v53 }
 0x104   : > { %v865_v39 = vmul.f32 %v861_v32, %v1900_v59  ;;  %v892_v40 = vadd.f32 %v878_v6, %v864_v33  ;;  %v863_v41 = vmul.f32 %v861_v32, %v1891_v52  ;;  %v890_v42 = vadd.f32 %v873_v16, %v862_v34  ;;  %1489 = vmatmul.mubr.msk.f32.gmra.mxu0 %vm1016_vm9, %v990_v31  ;;  %v1962_v33 = vpop.permute.xlu1 %1132 }
 0x105   : > { %v869_v43 = vmul.f32 %v861_v32, %v1910_v9  ;;  %v896_v48 = vadd.f32 %v888_v15, %v868_v35  ;;  %v867_v50 = vmul.f32 %v861_v32, %v1902_v60  ;;  %v894_v51 = vadd.f32 %v883_v25, %v866_v37  ;;  %1111 = vmatprep.mubr.f32.mxu0 %v1621_v1 }
 0x106   : > { %v893_v56 = vadd.f32 %v878_v6, %v865_v39  ;;  %v891_v57 = vadd.f32 %v873_v16, %v863_v41  ;;  %v1948_v58 = vadd.f32 %v892_v40, %v1895_v54  ;;  %v898_v61 = vadd.f32 %v890_v42, %v1889_v49 }
 0x107   : > { %v897_v63 = vadd.f32 %v888_v15, %v869_v43  ;;  %v895_v2 = vadd.f32 %v883_v25, %v867_v50  ;;  %v902_v4 = vadd.f32 %v894_v51, %v1893_v53  ;;  %v904_v5 = vadd.f32 %v896_v48, %v1907_v7 }
 0x108   : > { %v1954_v8 = vadd.f32 %v893_v56, %v1900_v59  ;;  %v924_v10 = vmul.f32 %v912_v24, %v1948_v58  ;;  %v899_v6 = vadd.f32 %v891_v57, %v1891_v52  ;;  %v922_v11 = vmul.f32 %v908_v38, %v898_v61  ;;  %1490 = vmatmul.mubr.msk.f32.gmra.mxu0 %vm1016_vm9, %v991_v55  ;;  %v1234_v40 = vpop.permute.xlu1 %1233 }
 0x109   : > { %v903_v12 = vadd.f32 %v895_v2, %v1902_v60  ;;  %v926_v13 = vmul.f32 %v916_v36, %v902_v4  ;;  %v905_v18 = vadd.f32 %v897_v63, %v1910_v9  ;;  %v928_v22 = vmul.f32 %v920_v14, %v904_v5 }
 0x10a   : > { %v925_v15 = vmul.f32 %v912_v24, %v1954_v8  ;;  %v923_v16 = vmul.f32 %v908_v38, %v899_v6  ;;  %v930_v17 = vadd.f32 %v924_v10, %v922_v11  ;;  %v970_v38 = vpop.permute.xlu0 %969 }
 0x10b   : > { %v927_v20 = vmul.f32 %v916_v36, %v903_v12  ;;  %v929_v26 = vmul.f32 %v920_v14, %v905_v18 }
 0x10c   : > { %v939_v19 = vadd.f32 %v925_v15, %v923_v16  ;;  %v931_v21 = vadd.f32 %v930_v17, %v926_v13  ;;  %v1239_v11 = vpop.permute.xlu1 %1238 }
 0x10e   : > { %v940_v25 = vadd.f32 %v939_v19, %v927_v20  ;;  %v932_v27 = vadd.f32 %v931_v21, %v928_v22  ;;  %v1967_v55 = vpop.permute.xlu0 %1137 }
 0x110   : > { %v933_v28 = vrot.slane %v932_v27, 4  ;;  %v941_v29 = vadd.f32 %v940_v25, %v929_v26 }
 0x112   : > { %v934_v31 = vadd.f32 %v933_v28, %v932_v27  ;;  %v942_v32 = vrot.slane %v941_v29, 4 }
 0x114   : > { %v935_v24 = vrot.slane %v934_v31, 2  ;;  %v943_v34 = vadd.f32 %v942_v32, %v941_v29 }
 0x116   : > { %v936_v35 = vadd.f32 %v935_v24, %v934_v31  ;;  %v944_v37 = vrot.slane %v943_v34, 2 }
 0x118   : > { %v937_v39 = vrot.slane %v936_v35, 1  ;;  %v945_v36 = vadd.f32 %v944_v37, %v943_v34 }
 0x11a   : > { %v938_v41 = vadd.f32 %v937_v39, %v936_v35  ;;  %v946_v42 = vrot.slane %v945_v36, 1 }
 0x11c   : > { %v947_v43 = vadd.f32 %v946_v42, %v945_v36  ;;  %v948_v48 = vmul.f32 %v938_v41, %v1889_v49  ;;  %v952_v50 = vmul.f32 %v938_v41, %v1893_v53  ;;  %v950_v51 = vmul.f32 %v938_v41, %v1895_v54 }
 0x11d   : > { %v954_v56 = vmul.f32 %v938_v41, %v1907_v7 }
 0x11e   : > { %v949_v57 = vmul.f32 %v947_v43, %v1891_v52  ;;  %v972_v63 = vadd.f32 %v958_v62, %v948_v48  ;;  %v953_v2 = vmul.f32 %v947_v43, %v1902_v60  ;;  %v976_v10 = vadd.f32 %v966_v23, %v952_v50  ;;  %v1244_v60 = vpop.permute.xlu0 %1243 }
 0x11f   : > { %v951_v13 = vmul.f32 %v947_v43, %v1900_v59  ;;  %v974_v14 = vadd.f32 %v962_v30, %v950_v51  ;;  %v955_v49 = vmul.f32 %v947_v43, %v1910_v9  ;;  %v978_v15 = vadd.f32 %v970_v38, %v954_v56  ;;  %v1249_v9 = vpop.permute.xlu1 %1248 }
 0x120   : > { %v973_v53 = vadd.f32 %v958_v62, %v949_v57  ;;  %v977_v16 = vadd.f32 %v966_v23, %v953_v2  ;;  %v980_v54 = vadd.f32 %v972_v63, %v898_v61  ;;  %v984_v17 = vadd.f32 %v976_v10, %v902_v4 }
 0x121   : > { %v975_v19 = vadd.f32 %v962_v30, %v951_v13  ;;  %v979_v20 = vadd.f32 %v970_v38, %v955_v49  ;;  %v982_v7 = vadd.f32 %v974_v14, %v1948_v58  ;;  %v986_v52 = vadd.f32 %v978_v15, %v904_v5 }
 0x122   : > { %v981_v21 = vadd.f32 %v973_v53, %v899_v6  ;;  %v1251_v22 = vmul.f32 %v1234_v40, %v980_v54  ;;  %v985_v25 = vadd.f32 %v977_v16, %v903_v12  ;;  %v1255_v23 = vmul.f32 %v1244_v60, %v984_v17  ;;  %v1278_v12 = vld [vmem:[%s2048_s9 + $0x8] sm:$0xff] }
 0x123   : > { %v983_v26 = vadd.f32 %v975_v19, %v1954_v8  ;;  %v1253_v59 = vmul.f32 %v1239_v11, %v982_v7  ;;  %v987_v27 = vadd.f32 %v979_v20, %v905_v18  ;;  %v1257_v4 = vmul.f32 %v1249_v9, %v986_v52  ;;  %v1277_v8 = vld [vmem:[%s2048_s9] sm:$0xff]  ;;  %1286 = vperm.xlu1 %1549, %v1278_v12  }
 0x124   : > { %v1252_v28 = vmul.f32 %v1234_v40, %v981_v21  ;;  %v1256_v30 = vmul.f32 %v1244_v60, %v985_v25  ;;  %1281 = vperm.xlu0 %1550, %v1277_v8  }
 0x125   : > { %v1254_v29 = vmul.f32 %v1239_v11, %v983_v26  ;;  %v1259_v62 = vadd.f32 %v1253_v59, %v1251_v22  ;;  %v1258_v32 = vmul.f32 %v1249_v9, %v987_v27 }
 0x127   : > { %v1268_v61 = vadd.f32 %v1254_v29, %v1252_v28  ;;  %v1260_v31 = vadd.f32 %v1259_v62, %v1255_v23 }
 0x129   : > { %v1261_v58 = vadd.f32 %v1260_v31, %v1257_v4  ;;  %v1269_v5 = vadd.f32 %v1268_v61, %v1256_v30 }
 0x12b   : > { %v1270_v6 = vadd.f32 %v1269_v5, %v1258_v32  ;;  %v1262_v53 = vrot.slane %v1261_v58, 4 }
 0x12d   : > { %v1271_v17 = vrot.slane %v1270_v6, 4 }
 0x12f   : > { %v1272_v26 = vadd.f32 %v1271_v17, %v1270_v6 }
 0x131   : > { %v1273_v23 = vrot.slane %v1272_v26, 2 }
 0x19e   : > { %v1287_v60 = vpop.permute.xlu1 %1286 }
 0x19f   : > { %v1282_v25 = vpop.permute.xlu0 %1281 }
 0x1bc   : > { %v1095_v18 = vpop.f32.mrf.mxu0 }
 0x1bd   : > { %v1096_v2 = vadd.f32 %v1095_v18, %v1887_v47 }
 0x1be   : > { %v1097_v24 = vpop.f32.mrf.mxu0 }
 0x1bf   : > { %v1098_v57 = vadd.f32 %v1097_v24, %v1887_v47  ;;  %v1127_v47 = vld [vmem:[%s2045_s6 + $0x8] sm:$0xff] }
 0x1c0   : > { %v1101_v34 = vpop.f32.mrf.mxu0 }
 0x1c1   : > { %v1102_v51 = vadd.f32 %v1101_v34, %v1883_v45 }
 0x1c2   : > { %v1103_v35 = vpop.f32.mrf.mxu0 }
 0x1c3   : > { %v1104_v48 = vadd.f32 %v1103_v35, %v1883_v45  ;;  %v1120_v13 = vmax.f32 %v1102_v51, 0.0  ;;  %v1126_v45 = vld [vmem:[%s2045_s6] sm:$0xff] }
 0x1c4   : > { %v1107_v37 = vpop.f32.mrf.mxu0 }
 0x1c5   : > { %v1108_v43 = vadd.f32 %v1107_v37, %v1885_v46  ;;  %v1121_v11 = vmax.f32 %v1104_v48, 0.0 }
 0x1c6   : > { %v1109_v38 = vpop.f32.mrf.mxu0 }
 0x1c7   : > { %v1110_v41 = vadd.f32 %v1109_v38, %v1885_v46  ;;  %v1122_v10 = vmax.f32 %v1108_v43, 0.0  ;;  %v1118_v46 = vmax.f32 %v1096_v2, 0.0 }
 0x1c8   : > { %v1113_v39 = vpop.f32.mrf.mxu0 }
 0x1c9   : > { %v1114_v36 = vadd.f32 %v1113_v39, %v1881_v44  ;;  %v1123_v63 = vmax.f32 %v1110_v41, 0.0  ;;  %v1310_v39 = vstv %s1309_s26  ;;  %s1626_s26 = smov [#allocation3]  }
 0x1ca   : > { %v1115_v40 = vpop.f32.mrf.mxu0  ;;  %s1563_s10 = sshll.u32 %s1626_s26, 4  ;;  %s1564_s10 = int_to_ptr.vmem [resolvable:$false] %s1563_s10 }
 0x1cb   : > { %v1116_v42 = vadd.f32 %v1115_v40, %v1881_v44  ;;  %v1124_v56 = vmax.f32 %v1114_v36, 0.0  ;;  %v1119_v44 = vmax.f32 %v1098_v57, 0.0  ;;  %s1565_s13 = scalar_lea.vmem %s1564_s10, 64  ;;  %p1566_p0 = scmp.lt.s32.totalorder %s1364_s15, %s1564_s10 }
 0x1cc   : > { %p1567_p1 = scmp.lt.s32.totalorder %s1565_s13, %s1559_s25 }
 0x1cd   : > { %v1125_v50 = vmax.f32 %v1116_v42, 0.0 }
 0x1ce   : > { %p1568_p2 = por %p1567_p1, %p1566_p0 }
 0x1cf   : > { %1170 = vmatprep.subr.mxu1 %v1125_v50 }
 0x1d0   : > { %1171 = vmatpush1.msra.mxu1 %v1124_v56  ;;  %p1569_p3 = pnand %p1568_p2, %p1562_p13 }
 0x1d1   : > { %1172 = vmatprep.subr.mxu1 %v1123_v63 }
 0x1d2   : > { %1173 = vmatpush1.msra.mxu1 %v1122_v10  ;;  %v1625_v10 = vmov 1966171168  }
 0x1d3   : > { %1174 = vmatprep.subr.mxu1 %v1121_v11  ;;  %v1329_v11 = vunpack.c.l.s4 %v1625_v10 }
 0x1d4   : > { %1175 = vmatpush1.msra.mxu1 %v1120_v13 }
 0x1d5   : > { %1176 = vmatprep.subr.mxu1 %v1119_v44  ;;  %v1330_v13 = vunpack.c.0.s8 %v1329_v11 }
 0x1d6   : > { %1177 = vmatpush1.msra.mxu1 %v1118_v46 }
 0x1d7   : > { %1491 = vmatmul.mubr.msk.f32.vlgmr.msra.gmra.mxu1 %vm1016_vm9, %v1126_v45  ;;  %v1333_v46 = vsub.s32 %v1330_v13, %v1745_v3 }
 0x1d8   : > { %1216 = vmatprep.mubr.f32.mxu1 %v1621_v1  ;;  %v1263_v1 = vadd.f32 %v1262_v53, %v1261_v58  ;;  %v1274_v58 = vadd.f32 %v1273_v23, %v1272_v26 }
 0x1da   : > { %v1264_v9 = vrot.slane %v1263_v1, 2  ;;  %v1275_v18 = vrot.slane %v1274_v58, 1 }
 0x1db   : > { %1492 = vmatmul.mubr.msk.f32.gmra.mxu1 %vm1016_vm9, %v1127_v47 }
 0x1dc   : > { %v1265_v30 = vadd.f32 %v1264_v9, %v1263_v1  ;;  %v1276_v36 = vadd.f32 %v1275_v18, %v1274_v58 }
 0x1de   : > { %v1266_v12 = vrot.slane %v1265_v30, 1 }
 0x1e0   : > { %v1267_v35 = vadd.f32 %v1266_v12, %v1265_v30 }
 0x297   : > { %v1212_v14 = vpop.f32.mrf.mxu1 }
 0x298   : > { %v1213_v49 = vadd.f32 %v1212_v14, %v1962_v33 }
 0x299   : > { %v1214_v15 = vpop.f32.mrf.mxu1 }
 0x29a   : > { %v1215_v16 = vadd.f32 %v1214_v15, %v1962_v33  ;;  %v1223_v19 = vmax.f32 %v1213_v49, 0.0 }
 0x29b   : > { %v1218_v54 = vpop.f32.mrf.mxu1 }
 0x29c   : > { %v1219_v20 = vadd.f32 %v1218_v54, %v1967_v55  ;;  %v1224_v52 = vmax.f32 %v1215_v16, 0.0  ;;  %v1289_v59 = vmul.f32 %v1282_v25, %v1223_v19 }
 0x29d   : > { %v1220_v7 = vpop.f32.mrf.mxu1 }
 0x29e   : > { %v1225_v21 = vmax.f32 %v1219_v20, 0.0  ;;  %v1221_v22 = vadd.f32 %v1220_v7, %v1967_v55  ;;  %v1290_v29 = vmul.f32 %v1282_v25, %v1224_v52 }
 0x2a0   : > { %v1291_v27 = vmul.f32 %v1287_v60, %v1225_v21  ;;  %v1226_v28 = vmax.f32 %v1221_v22, 0.0 }
 0x2a2   : > { %v1293_v33 = vadd.f32 %v1291_v27, %v1289_v59  ;;  %v1292_v62 = vmul.f32 %v1287_v60, %v1226_v28 }
 0x2a4   : > { %v1294_v61 = vrot.slane %v1293_v33, 4  ;;  %v1300_v4 = vadd.f32 %v1292_v62, %v1290_v29 }
 0x2a6   : > { %v1295_v31 = vadd.f32 %v1294_v61, %v1293_v33  ;;  %v1301_v32 = vrot.slane %v1300_v4, 4 }
 0x2a8   : > { %v1296_v5 = vrot.slane %v1295_v31, 2  ;;  %v1302_v55 = vadd.f32 %v1301_v32, %v1300_v4 }
 0x2aa   : > { %v1297_v8 = vadd.f32 %v1296_v5, %v1295_v31  ;;  %v1303_v6 = vrot.slane %v1302_v55, 2 }
 0x2ac   : > { %v1298_v24 = vrot.slane %v1297_v8, 1  ;;  %v1304_v34 = vadd.f32 %v1303_v6, %v1302_v55 }
 0x2ae   : > { %v1299_v37 = vadd.f32 %v1298_v24, %v1297_v8  ;;  %v1305_v38 = vrot.slane %v1304_v34, 1 }
 0x2b0   : > { %v1307_v40 = vadd.f32 %v1299_v37, %v1267_v35  ;;  %v1306_v41 = vadd.f32 %v1305_v38, %v1304_v34 }
 0x2b2   : > { %v1311_v42 = vadd.f32 %v1310_v39, %v1307_v40  ;;  %v1308_v43 = vadd.f32 %v1306_v41, %v1276_v36 }
 0x2b4   : > { %v1493_v48 = vmul.f32 -1.442695, %v1311_v42  ;;  %v1312_v50 = vadd.f32 %v1310_v39, %v1308_v43 }
 0x2b6   : > { %1551 = vpow2.f32 %v1493_v48  ;;  %v1494_v51 = vmul.f32 -1.442695, %v1312_v50 }
 0x2b8   : > { %1553 = vpow2.f32 %v1494_v51 }
 0x2c3   : > { %v1552_v56 = vpop.eup %1551 }
 0x2c4   : > { %v1319_v57 = vadd.f32 1.0, %v1552_v56 }
 0x2c5   : > { %v1554_v63 = vpop.eup %1553 }
 0x2c6   : > { %v1320_v2 = vadd.f32 1.0, %v1554_v63  ;;  %1555 = vrcp.f32 %v1319_v57 }
 0x2c8   : > { %1557 = vrcp.f32 %v1320_v2 }
 0x2d3   : > { %v1556_v44 = vpop.eup %1555 }
 0x2d5   : > { %v1558_v45 = vpop.eup %1557 }
 0x2d6   : > { %v1327_v47 = vcombine.low %v1556_v44, %v1558_v45 }
 0x2d8   : > { %v1334_v14 = vrot.slane %v1327_v47, %v1333_v46 }
 0x2da   : > { %v1341_v49 = vrot.slane %v1334_v14, %v1333_v46 }
 0x2dc   : > { %1347 = vst.msk [vmem:[%s381_s14] sm:$0x3] %vm1345_vm10, %v1341_v49 }
 0x2dd   : > { %1572 = shalt.err (!%p1569_p3)
}
 0x2de   : > { %s1573_s0 = scalar_lea.hbm %s1361_s18, 32  ;;  %s1577_s14 = scalar_lea.hbm %s2050_s11, 256 }
 0x2df   : > { %p1574_p4 = scmp.ne.s32.totalorder %s1361_s18, %s1573_s0  ;;  %p1578_p9 = scmp.lt.s32.totalorder %s1361_s18, %s2050_s11 }
 0x2e0   : > { %p1579_p10 = scmp.lt.s32.totalorder %s1577_s14, %s1573_s0 }
 0x2e1   : > { %p1575_p7 = pnand %p1574_p4, %p1728_p5 }
 0x2e2   : > { %p1580_p11 = por %p1579_p10, %p1578_p9 }
 0x2e3   : > { %p1576_p8 = pneg %p1575_p7 }
 0x2e5   : > { %p1581_p12 = pnand %p1580_p11, %p1576_p8 }
 0x2e7   : > { %1584 = shalt.err (!%p1581_p12)
}
 0x2e8   : > { %1501 = dma.vmem_to_hbm [thread:$0]  (%p1728_p5), %s1364_s15, 32, %s1361_s18, %s1349_s23  }
 0x2e9 PF: > { %p1507_p13 = scmp.ge.s32.totalorder %s1619_s22, 2  ;;  %s1375_s25 = sand.u32 1, %s1607_s19  }
 0x2ea   : > { %s1376_s26 = scalar_lea.sflag [#allocation4], %s1375_s25 }
 0x2eb   : > { %p1504_p0 = pnand %p1507_p13, %p1732_p6 }
 0x2ed   : > { %p1505_p1 = pneg %p1504_p0 }
 0x2ef   : > { %1602 = dma.done.wait (%p1505_p1), %s1376_s26, 32  }
 0x2f0   : > { %1604 = vsyncadd (%p1505_p1), %s1376_s26, 4294967264  ;;  %p22_p2 = scmp.ge.s32.totalorder %s1715_s24, 10   ;;  %s2055_s19 = smov %s1611_s20 }
 0x2f1   : > { %s2056_s20 = smov %s1615_s21  ;;  %s2057_s21 = smov %s1726_s27 }
 0x2f2   : > { %s2058_s22 = smov %s1715_s24  ;;  %24 = sbr.rel (!%p22_p2) target bundleno = 6 (0x6), region = 105 }
 0x2f7   :  { %1381 = vsyncpa [#allocation4], 1 }
 0x2f8   :  { %1383 = vsyncpa [#allocation4 + $0x1], 1 }

</bundles_post_ra>
